<compile_context>
chip_gen: v5e
topology: v5e:2x2
jax: 0.10.0
libtpu: 0.0.40
codegen_flags: <defaults>
</compile_context>

<pallas_src>
import jax
import jax.numpy as jnp
from jax.experimental import pallas as pl
from jax.experimental.pallas import tpu as pltpu

N_EMBD = 32
NUM_HEADS = 4
HEAD_SIZE = N_EMBD // NUM_HEADS  # 8, so concat of heads == n_embd (required by proj)


def _mha_kernel(x_ref, wqkv_ref, wp_ref, bp_ref, o_ref):
    # x_ref block: (bblk, T, C); wqkv_ref: (C, 3C); wp_ref: (H, hs, C); bp_ref: (1, C)
    bblk, T, C = x_ref.shape
    H, hs, _ = wp_ref.shape
    M = bblk * T

    # --- fused QKV projection: one 2D matmul for every token in the block ---
    # (bblk*T, C) @ (C, 3C); Q columns are pre-scaled by 1/sqrt(hs).
    xt = x_ref[...].reshape(M, C)
    qkv2 = jnp.dot(xt, wqkv_ref[...], preferred_element_type=jnp.float32)  # (M, 3C)
    qkv = qkv2.reshape(bblk, T, 3 * C)                                     # (bblk, T, 3C)

    # causal mask: position i may attend to positions j <= i (shared across b, h)
    row = jax.lax.broadcasted_iota(jnp.int32, (T, T), 0)
    col = jax.lax.broadcasted_iota(jnp.int32, (T, T), 1)
    causal = (col <= row)[None]                                            # (1, T, T)

    acc = jnp.zeros((M, C), jnp.float32)
    for h in range(H):                 # static unroll over heads (H = 4)
        q = qkv[:, :, h * hs:(h + 1) * hs]                                 # (bblk, T, hs)
        k = qkv[:, :, C + h * hs:C + (h + 1) * hs]                         # (bblk, T, hs)
        v = qkv[:, :, 2 * C + h * hs:2 * C + (h + 1) * hs]                 # (bblk, T, hs)

        # scores for the whole batch block at once (K-transpose folded in)
        s = jnp.einsum('bqd,bkd->bqk', q, k,
                       preferred_element_type=jnp.float32)                 # (bblk, T, T)
        s = jnp.where(causal, s, -jnp.inf)

        # numerically-stable softmax along last axis (matches F.softmax)
        m = jnp.max(s, axis=-1, keepdims=True)
        e = jnp.exp(s - m)
        wei = e * pl.reciprocal(jnp.sum(e, axis=-1, keepdims=True), approx=False)

        head = jnp.einsum('bqk,bkd->bqd', wei, v,
                          preferred_element_type=jnp.float32)              # (bblk, T, hs)
        # accumulate the output projection per head (no lane concat); 2D matmul
        acc = acc + jnp.dot(head.reshape(M, hs), wp_ref[h],
                            preferred_element_type=jnp.float32)            # (M, C)

    out = acc + bp_ref[...]            # (M, C) + (1, C) broadcast
    o_ref[...] = out.reshape(bblk, T, C).astype(o_ref.dtype)


def _pick_batch_block(B, max_batch_block=8):
    """Largest batch block <= max_batch_block that divides B while keeping
    >= 2 grid steps when B >= 2 (so both v7x TensorCores get work)."""
    if B <= 1:
        return max(B, 1)
    best = 1
    for d in range(1, min(B, max_batch_block) + 1):
        if B % d == 0 and B // d >= 2:
            best = d
    return best


def multihead_attention(x, wqkv, wp, bp, *, max_batch_block=8):
    """x: (B, T, C); wqkv: (C, 3C) packed [Q|K|V] head-major (Q pre-scaled);
    wp: (H, hs, C); bp: (1, C)."""
    B, T, C = x.shape
    bblk = _pick_batch_block(B, max_batch_block)
    grid = (B // bblk,)
    return pl.pallas_call(
        _mha_kernel,
        out_shape=jax.ShapeDtypeStruct((B, T, C), x.dtype),
        grid=grid,
        in_specs=[
            pl.BlockSpec((bblk, T, C), lambda i: (i, 0, 0)),
            pl.BlockSpec(wqkv.shape, lambda i: (0, 0)),
            pl.BlockSpec(wp.shape, lambda i: (0, 0, 0)),
            pl.BlockSpec(bp.shape, lambda i: (0, 0)),
        ],
        out_specs=pl.BlockSpec((bblk, T, C), lambda i: (i, 0, 0)),
        compiler_params=pltpu.CompilerParams(dimension_semantics=("parallel",)),
    )(x, wqkv, wp, bp)


def _init_params(key, num_heads, head_size, n_embd):
    """Deterministic init mimicking nn.Linear's U(-1/sqrt(fan_in), 1/sqrt(fan_in))."""
    keys = jax.random.split(key, 5)
    bound = 1.0 / (n_embd ** 0.5)
    # Per-head query/key/value weights, already transposed to (H, C, hs)
    wq = jax.random.uniform(keys[0], (num_heads, n_embd, head_size),
                            jnp.float32, -bound, bound)
    wk = jax.random.uniform(keys[1], (num_heads, n_embd, head_size),
                            jnp.float32, -bound, bound)
    wv = jax.random.uniform(keys[2], (num_heads, n_embd, head_size),
                            jnp.float32, -bound, bound)
    # Output projection (C, C) (transposed vs. PyTorch weight) and bias (1, C)
    wp = jax.random.uniform(keys[3], (n_embd, n_embd), jnp.float32, -bound, bound)
    bp = jax.random.uniform(keys[4], (1, n_embd), jnp.float32, -bound, bound)
    return wq, wk, wv, wp, bp


def pack_params(wq, wk, wv, wp, bp):
    """Build the kernel-friendly packed parameters (done once at init time).

    wqkv: (C, 3C) with columns [Q heads | K heads | V heads], head-major;
          the 1/sqrt(head_size) attention scale is folded into the Q columns.
    wp_r: (H, hs, C) so head h's projection slice is wp_r[h].
    """
    H, C, hs = wq.shape
    scale = 1.0 / (hs ** 0.5)

    def to_cols(w):  # (H, C, hs) -> (C, H*hs), head-major columns
        return jnp.transpose(w, (1, 0, 2)).reshape(C, H * hs)

    wqkv = jnp.concatenate([to_cols(wq) * scale, to_cols(wk), to_cols(wv)], axis=1)
    wp_r = wp.reshape(H, hs, C)
    return wqkv, wp_r, bp


def _reference(x, wq, wk, wv, wp, bp):
    """Plain-JAX reference of the PyTorch forward (eval mode)."""
    B, T, C = x.shape
    H, _, hs = wq.shape
    q = jnp.einsum('btc,hcd->bhtd', x, wq)
    k = jnp.einsum('btc,hcd->bhtd', x, wk)
    v = jnp.einsum('btc,hcd->bhtd', x, wv)
    s = jnp.einsum('bhtd,bhsd->bhts', q, k) * (hs ** -0.5)
    mask = jnp.tril(jnp.ones((T, T), bool))
    s = jnp.where(mask, s, -jnp.inf)
    wei = jax.nn.softmax(s, axis=-1)
    out = jnp.einsum('bhts,bhsd->bhtd', wei, v)              # (B, H, T, hs)
    out = jnp.transpose(out, (0, 2, 1, 3)).reshape(B, T, H * hs)
    return out @ wp + bp[0]


if __name__ == "__main__":
    key = jax.random.PRNGKey(0)
    kx, kp, kx2 = jax.random.split(key, 3)
    wq, wk, wv, wp, bp = _init_params(kp, NUM_HEADS, HEAD_SIZE, N_EMBD)
    wqkv, wp_r, bp_p = pack_params(wq, wk, wv, wp, bp)

    # Primary case: B=2, T=8 (T <= block_size = 256)
    B, T = 2, 8
    x = jax.random.normal(kx, (B, T, N_EMBD), jnp.float32)
    out = multihead_attention(x, wqkv, wp_r, bp_p)
    jax.block_until_ready(out)
    ref = _reference(x, wq, wk, wv, wp, bp)
    assert out.shape == (B, T, N_EMBD)
    assert jnp.allclose(out, ref, atol=1e-4, rtol=1e-4), "mismatch vs reference (B=2)"

    # Second case exercises a batch block > 1 (bblk = 4, grid = 2)
    B2, T2 = 8, 8
    x2 = jax.random.normal(kx2, (B2, T2, N_EMBD), jnp.float32)
    out2 = multihead_attention(x2, wqkv, wp_r, bp_p)
    jax.block_until_ready(out2)
    ref2 = _reference(x2, wq, wk, wv, wp, bp)
    assert jnp.allclose(out2, ref2, atol=1e-4, rtol=1e-4), "mismatch vs reference (B=8)"

    print("KERNEL_OK")
</pallas_src>

<mosaic_0001>
module attributes {stable_mosaic.version = 11 : i64} {
  func.func @_mha_kernel(%arg0: i32, %arg1: memref<1x8x32xf32, #tpu.memory_space<vmem>>, %arg2: memref<32x96xf32, #tpu.memory_space<vmem>>, %arg3: memref<4x8x32xf32, #tpu.memory_space<vmem>>, %arg4: memref<1x32xf32, #tpu.memory_space<vmem>>, %arg5: memref<1x8x32xf32, #tpu.memory_space<vmem>>) attributes {dimension_semantics = [#tpu.dimension_semantics<parallel>], iteration_bounds = array<i64: 2>, scalar_prefetch = 0 : i64, scratch_operands = 0 : i64, tpu.core_type = #tpu.core_type<tc>, window_params = [{transform_indices = @transform_0, window_bounds = array<i64: 1, 8, 32>}, {pipeline_mode = #tpu.pipeline_mode<synchronous>, transform_indices = @transform_1, window_bounds = array<i64: 32, 96>}, {pipeline_mode = #tpu.pipeline_mode<synchronous>, transform_indices = @transform_2, window_bounds = array<i64: 4, 8, 32>}, {pipeline_mode = #tpu.pipeline_mode<synchronous>, transform_indices = @transform_3, window_bounds = array<i64: 1, 32>}, {transform_indices = @transform_4, window_bounds = array<i64: 1, 8, 32>}]} {
    %c0 = arith.constant 0 : index
    %c0_0 = arith.constant 0 : index
    %c0_1 = arith.constant 0 : index
    %0 = vector.load %arg1[%c0, %c0_0, %c0_1] : memref<1x8x32xf32, #tpu.memory_space<vmem>>, vector<1x8x32xf32>
    %1 = vector.shape_cast %0 : vector<1x8x32xf32> to vector<8x32xf32>
    %c0_2 = arith.constant 0 : index
    %c0_3 = arith.constant 0 : index
    %2 = vector.load %arg2[%c0_2, %c0_3] : memref<32x96xf32, #tpu.memory_space<vmem>>, vector<32x96xf32>
    %cst = arith.constant dense<0.000000e+00> : vector<8x96xf32>
    %3 = tpu.matmul %1, %2, %cst {dimension_numbers = #tpu.dot_dimension_numbers<[1], [0], [0], [1], [0, 0, 1, 1], [], []>} : vector<8x32xf32>, vector<32x96xf32>, vector<8x96xf32> -> vector<8x96xf32>
    %4 = vector.shape_cast %3 : vector<8x96xf32> to vector<1x8x96xf32>
    %5 = tpu.iota {dimensions = array<i32: 0>} : vector<8x8xi32>
    %6 = tpu.iota {dimensions = array<i32: 1>} : vector<8x8xi32>
    %7 = arith.cmpi sle, %6, %5 : vector<8x8xi32>
    %8 = vector.shape_cast %7 : vector<8x8xi1> to vector<1x8x8xi1>
    %cst_4 = arith.constant 0.000000e+00 : f32
    %9 = vector.broadcast %cst_4 : f32 to vector<8x32xf32>
    %10 = vector.extract_strided_slice %4 {offsets = [0, 0, 0], sizes = [1, 8, 8], strides = [1, 1, 1]} : vector<1x8x96xf32> to vector<1x8x8xf32>
    %11 = vector.extract_strided_slice %4 {offsets = [0, 0, 32], sizes = [1, 8, 8], strides = [1, 1, 1]} : vector<1x8x96xf32> to vector<1x8x8xf32>
    %12 = vector.extract_strided_slice %4 {offsets = [0, 0, 64], sizes = [1, 8, 8], strides = [1, 1, 1]} : vector<1x8x96xf32> to vector<1x8x8xf32>
    "tpu.trace_start"() <{level = 10 : i32, message = "bqd,bkd->bqk"}> : () -> ()
    %cst_5 = arith.constant dense<0.000000e+00> : vector<1x8x8xf32>
    %13 = tpu.matmul %10, %11, %cst_5 {dimension_numbers = #tpu.dot_dimension_numbers<[2], [2], [1], [1], [0, 0, 0, 1, 1, 1], [0], [0]>} : vector<1x8x8xf32>, vector<1x8x8xf32>, vector<1x8x8xf32> -> vector<1x8x8xf32>
    %cst_6 = arith.constant 0xFF800000 : f32
    "tpu.trace_stop"() : () -> ()
    %14 = vector.broadcast %cst_6 : f32 to vector<1x8x8xf32>
    %15 = arith.select %8, %13, %14 : vector<1x8x8xi1>, vector<1x8x8xf32>
    %cst_7 = arith.constant dense<0xFF800000> : vector<1x8xf32>
    %16 = vector.multi_reduction <maximumf>, %15, %cst_7 [2] : vector<1x8x8xf32> to vector<1x8xf32>
    %17 = vector.shape_cast %16 : vector<1x8xf32> to vector<1x8x1xf32>
    %18 = vector.broadcast %17 : vector<1x8x1xf32> to vector<1x8x8xf32>
    %19 = arith.subf %15, %18 : vector<1x8x8xf32>
    %20 = math.exp %19 : vector<1x8x8xf32>
    %cst_8 = arith.constant dense<0.000000e+00> : vector<1x8xf32>
    %21 = vector.multi_reduction <add>, %20, %cst_8 [2] : vector<1x8x8xf32> to vector<1x8xf32>
    %22 = vector.shape_cast %21 : vector<1x8xf32> to vector<1x8x1xf32>
    %23 = tpu.reciprocal %22 : vector<1x8x1xf32> -> vector<1x8x1xf32>
    %24 = vector.broadcast %23 : vector<1x8x1xf32> to vector<1x8x8xf32>
    %25 = arith.mulf %20, %24 : vector<1x8x8xf32>
    "tpu.trace_start"() <{level = 10 : i32, message = "bqk,bkd->bqd"}> : () -> ()
    %cst_9 = arith.constant dense<0.000000e+00> : vector<1x8x8xf32>
    %26 = tpu.matmul %25, %12, %cst_9 {dimension_numbers = #tpu.dot_dimension_numbers<[2], [1], [1], [2], [0, 0, 0, 1, 1, 2], [0], [0]>} : vector<1x8x8xf32>, vector<1x8x8xf32>, vector<1x8x8xf32> -> vector<1x8x8xf32>
    "tpu.trace_stop"() : () -> ()
    %27 = vector.shape_cast %26 : vector<1x8x8xf32> to vector<8x8xf32>
    %c0_10 = arith.constant 0 : index
    %c0_11 = arith.constant 0 : index
    %c0_12 = arith.constant 0 : index
    %28 = vector.load %arg3[%c0_10, %c0_11, %c0_12] : memref<4x8x32xf32, #tpu.memory_space<vmem>>, vector<1x8x32xf32>
    %29 = vector.shape_cast %28 : vector<1x8x32xf32> to vector<8x32xf32>
    %cst_13 = arith.constant dense<0.000000e+00> : vector<8x32xf32>
    %30 = tpu.matmul %27, %29, %cst_13 {dimension_numbers = #tpu.dot_dimension_numbers<[1], [0], [0], [1], [0, 0, 1, 1], [], []>} : vector<8x8xf32>, vector<8x32xf32>, vector<8x32xf32> -> vector<8x32xf32>
    %31 = arith.addf %9, %30 : vector<8x32xf32>
    %32 = vector.extract_strided_slice %4 {offsets = [0, 0, 8], sizes = [1, 8, 8], strides = [1, 1, 1]} : vector<1x8x96xf32> to vector<1x8x8xf32>
    %33 = vector.extract_strided_slice %4 {offsets = [0, 0, 40], sizes = [1, 8, 8], strides = [1, 1, 1]} : vector<1x8x96xf32> to vector<1x8x8xf32>
    %34 = vector.extract_strided_slice %4 {offsets = [0, 0, 72], sizes = [1, 8, 8], strides = [1, 1, 1]} : vector<1x8x96xf32> to vector<1x8x8xf32>
    "tpu.trace_start"() <{level = 10 : i32, message = "bqd,bkd->bqk"}> : () -> ()
    %cst_14 = arith.constant dense<0.000000e+00> : vector<1x8x8xf32>
    %35 = tpu.matmul %32, %33, %cst_14 {dimension_numbers = #tpu.dot_dimension_numbers<[2], [2], [1], [1], [0, 0, 0, 1, 1, 1], [0], [0]>} : vector<1x8x8xf32>, vector<1x8x8xf32>, vector<1x8x8xf32> -> vector<1x8x8xf32>
    %cst_15 = arith.constant 0xFF800000 : f32
    "tpu.trace_stop"() : () -> ()
    %36 = vector.broadcast %cst_15 : f32 to vector<1x8x8xf32>
    %37 = arith.select %8, %35, %36 : vector<1x8x8xi1>, vector<1x8x8xf32>
    %cst_16 = arith.constant dense<0xFF800000> : vector<1x8xf32>
    %38 = vector.multi_reduction <maximumf>, %37, %cst_16 [2] : vector<1x8x8xf32> to vector<1x8xf32>
    %39 = vector.shape_cast %38 : vector<1x8xf32> to vector<1x8x1xf32>
    %40 = vector.broadcast %39 : vector<1x8x1xf32> to vector<1x8x8xf32>
    %41 = arith.subf %37, %40 : vector<1x8x8xf32>
    %42 = math.exp %41 : vector<1x8x8xf32>
    %cst_17 = arith.constant dense<0.000000e+00> : vector<1x8xf32>
    %43 = vector.multi_reduction <add>, %42, %cst_17 [2] : vector<1x8x8xf32> to vector<1x8xf32>
    %44 = vector.shape_cast %43 : vector<1x8xf32> to vector<1x8x1xf32>
    %45 = tpu.reciprocal %44 : vector<1x8x1xf32> -> vector<1x8x1xf32>
    %46 = vector.broadcast %45 : vector<1x8x1xf32> to vector<1x8x8xf32>
    %47 = arith.mulf %42, %46 : vector<1x8x8xf32>
    "tpu.trace_start"() <{level = 10 : i32, message = "bqk,bkd->bqd"}> : () -> ()
    %cst_18 = arith.constant dense<0.000000e+00> : vector<1x8x8xf32>
    %48 = tpu.matmul %47, %34, %cst_18 {dimension_numbers = #tpu.dot_dimension_numbers<[2], [1], [1], [2], [0, 0, 0, 1, 1, 2], [0], [0]>} : vector<1x8x8xf32>, vector<1x8x8xf32>, vector<1x8x8xf32> -> vector<1x8x8xf32>
    "tpu.trace_stop"() : () -> ()
    %49 = vector.shape_cast %48 : vector<1x8x8xf32> to vector<8x8xf32>
    %c1 = arith.constant 1 : index
    %c0_19 = arith.constant 0 : index
    %c0_20 = arith.constant 0 : index
    %50 = vector.load %arg3[%c1, %c0_19, %c0_20] : memref<4x8x32xf32, #tpu.memory_space<vmem>>, vector<1x8x32xf32>
    %51 = vector.shape_cast %50 : vector<1x8x32xf32> to vector<8x32xf32>
    %cst_21 = arith.constant dense<0.000000e+00> : vector<8x32xf32>
    %52 = tpu.matmul %49, %51, %cst_21 {dimension_numbers = #tpu.dot_dimension_numbers<[1], [0], [0], [1], [0, 0, 1, 1], [], []>} : vector<8x8xf32>, vector<8x32xf32>, vector<8x32xf32> -> vector<8x32xf32>
    %53 = arith.addf %31, %52 : vector<8x32xf32>
    %54 = vector.extract_strided_slice %4 {offsets = [0, 0, 16], sizes = [1, 8, 8], strides = [1, 1, 1]} : vector<1x8x96xf32> to vector<1x8x8xf32>
    %55 = vector.extract_strided_slice %4 {offsets = [0, 0, 48], sizes = [1, 8, 8], strides = [1, 1, 1]} : vector<1x8x96xf32> to vector<1x8x8xf32>
    %56 = vector.extract_strided_slice %4 {offsets = [0, 0, 80], sizes = [1, 8, 8], strides = [1, 1, 1]} : vector<1x8x96xf32> to vector<1x8x8xf32>
    "tpu.trace_start"() <{level = 10 : i32, message = "bqd,bkd->bqk"}> : () -> ()
    %cst_22 = arith.constant dense<0.000000e+00> : vector<1x8x8xf32>
    %57 = tpu.matmul %54, %55, %cst_22 {dimension_numbers = #tpu.dot_dimension_numbers<[2], [2], [1], [1], [0, 0, 0, 1, 1, 1], [0], [0]>} : vector<1x8x8xf32>, vector<1x8x8xf32>, vector<1x8x8xf32> -> vector<1x8x8xf32>
    %cst_23 = arith.constant 0xFF800000 : f32
    "tpu.trace_stop"() : () -> ()
    %58 = vector.broadcast %cst_23 : f32 to vector<1x8x8xf32>
    %59 = arith.select %8, %57, %58 : vector<1x8x8xi1>, vector<1x8x8xf32>
    %cst_24 = arith.constant dense<0xFF800000> : vector<1x8xf32>
    %60 = vector.multi_reduction <maximumf>, %59, %cst_24 [2] : vector<1x8x8xf32> to vector<1x8xf32>
    %61 = vector.shape_cast %60 : vector<1x8xf32> to vector<1x8x1xf32>
    %62 = vector.broadcast %61 : vector<1x8x1xf32> to vector<1x8x8xf32>
    %63 = arith.subf %59, %62 : vector<1x8x8xf32>
    %64 = math.exp %63 : vector<1x8x8xf32>
    %cst_25 = arith.constant dense<0.000000e+00> : vector<1x8xf32>
    %65 = vector.multi_reduction <add>, %64, %cst_25 [2] : vector<1x8x8xf32> to vector<1x8xf32>
    %66 = vector.shape_cast %65 : vector<1x8xf32> to vector<1x8x1xf32>
    %67 = tpu.reciprocal %66 : vector<1x8x1xf32> -> vector<1x8x1xf32>
    %68 = vector.broadcast %67 : vector<1x8x1xf32> to vector<1x8x8xf32>
    %69 = arith.mulf %64, %68 : vector<1x8x8xf32>
    "tpu.trace_start"() <{level = 10 : i32, message = "bqk,bkd->bqd"}> : () -> ()
    %cst_26 = arith.constant dense<0.000000e+00> : vector<1x8x8xf32>
    %70 = tpu.matmul %69, %56, %cst_26 {dimension_numbers = #tpu.dot_dimension_numbers<[2], [1], [1], [2], [0, 0, 0, 1, 1, 2], [0], [0]>} : vector<1x8x8xf32>, vector<1x8x8xf32>, vector<1x8x8xf32> -> vector<1x8x8xf32>
    "tpu.trace_stop"() : () -> ()
    %71 = vector.shape_cast %70 : vector<1x8x8xf32> to vector<8x8xf32>
    %c2 = arith.constant 2 : index
    %c0_27 = arith.constant 0 : index
    %c0_28 = arith.constant 0 : index
    %72 = vector.load %arg3[%c2, %c0_27, %c0_28] : memref<4x8x32xf32, #tpu.memory_space<vmem>>, vector<1x8x32xf32>
    %73 = vector.shape_cast %72 : vector<1x8x32xf32> to vector<8x32xf32>
    %cst_29 = arith.constant dense<0.000000e+00> : vector<8x32xf32>
    %74 = tpu.matmul %71, %73, %cst_29 {dimension_numbers = #tpu.dot_dimension_numbers<[1], [0], [0], [1], [0, 0, 1, 1], [], []>} : vector<8x8xf32>, vector<8x32xf32>, vector<8x32xf32> -> vector<8x32xf32>
    %75 = arith.addf %53, %74 : vector<8x32xf32>
    %76 = vector.extract_strided_slice %4 {offsets = [0, 0, 24], sizes = [1, 8, 8], strides = [1, 1, 1]} : vector<1x8x96xf32> to vector<1x8x8xf32>
    %77 = vector.extract_strided_slice %4 {offsets = [0, 0, 56], sizes = [1, 8, 8], strides = [1, 1, 1]} : vector<1x8x96xf32> to vector<1x8x8xf32>
    %78 = vector.extract_strided_slice %4 {offsets = [0, 0, 88], sizes = [1, 8, 8], strides = [1, 1, 1]} : vector<1x8x96xf32> to vector<1x8x8xf32>
    "tpu.trace_start"() <{level = 10 : i32, message = "bqd,bkd->bqk"}> : () -> ()
    %cst_30 = arith.constant dense<0.000000e+00> : vector<1x8x8xf32>
    %79 = tpu.matmul %76, %77, %cst_30 {dimension_numbers = #tpu.dot_dimension_numbers<[2], [2], [1], [1], [0, 0, 0, 1, 1, 1], [0], [0]>} : vector<1x8x8xf32>, vector<1x8x8xf32>, vector<1x8x8xf32> -> vector<1x8x8xf32>
    %cst_31 = arith.constant 0xFF800000 : f32
    "tpu.trace_stop"() : () -> ()
    %80 = vector.broadcast %cst_31 : f32 to vector<1x8x8xf32>
    %81 = arith.select %8, %79, %80 : vector<1x8x8xi1>, vector<1x8x8xf32>
    %cst_32 = arith.constant dense<0xFF800000> : vector<1x8xf32>
    %82 = vector.multi_reduction <maximumf>, %81, %cst_32 [2] : vector<1x8x8xf32> to vector<1x8xf32>
    %83 = vector.shape_cast %82 : vector<1x8xf32> to vector<1x8x1xf32>
    %84 = vector.broadcast %83 : vector<1x8x1xf32> to vector<1x8x8xf32>
    %85 = arith.subf %81, %84 : vector<1x8x8xf32>
    %86 = math.exp %85 : vector<1x8x8xf32>
    %cst_33 = arith.constant dense<0.000000e+00> : vector<1x8xf32>
    %87 = vector.multi_reduction <add>, %86, %cst_33 [2] : vector<1x8x8xf32> to vector<1x8xf32>
    %88 = vector.shape_cast %87 : vector<1x8xf32> to vector<1x8x1xf32>
    %89 = tpu.reciprocal %88 : vector<1x8x1xf32> -> vector<1x8x1xf32>
    %90 = vector.broadcast %89 : vector<1x8x1xf32> to vector<1x8x8xf32>
    %91 = arith.mulf %86, %90 : vector<1x8x8xf32>
    "tpu.trace_start"() <{level = 10 : i32, message = "bqk,bkd->bqd"}> : () -> ()
    %cst_34 = arith.constant dense<0.000000e+00> : vector<1x8x8xf32>
    %92 = tpu.matmul %91, %78, %cst_34 {dimension_numbers = #tpu.dot_dimension_numbers<[2], [1], [1], [2], [0, 0, 0, 1, 1, 2], [0], [0]>} : vector<1x8x8xf32>, vector<1x8x8xf32>, vector<1x8x8xf32> -> vector<1x8x8xf32>
    "tpu.trace_stop"() : () -> ()
    %93 = vector.shape_cast %92 : vector<1x8x8xf32> to vector<8x8xf32>
    %c3 = arith.constant 3 : index
    %c0_35 = arith.constant 0 : index
    %c0_36 = arith.constant 0 : index
    %94 = vector.load %arg3[%c3, %c0_35, %c0_36] : memref<4x8x32xf32, #tpu.memory_space<vmem>>, vector<1x8x32xf32>
    %95 = vector.shape_cast %94 : vector<1x8x32xf32> to vector<8x32xf32>
    %cst_37 = arith.constant dense<0.000000e+00> : vector<8x32xf32>
    %96 = tpu.matmul %93, %95, %cst_37 {dimension_numbers = #tpu.dot_dimension_numbers<[1], [0], [0], [1], [0, 0, 1, 1], [], []>} : vector<8x8xf32>, vector<8x32xf32>, vector<8x32xf32> -> vector<8x32xf32>
    %97 = arith.addf %75, %96 : vector<8x32xf32>
    %c0_38 = arith.constant 0 : index
    %c0_39 = arith.constant 0 : index
    %98 = vector.load %arg4[%c0_38, %c0_39] : memref<1x32xf32, #tpu.memory_space<vmem>>, vector<1x32xf32>
    %99 = vector.broadcast %98 : vector<1x32xf32> to vector<8x32xf32>
    %100 = arith.addf %97, %99 : vector<8x32xf32>
    %101 = vector.shape_cast %100 : vector<8x32xf32> to vector<1x8x32xf32>
    %c0_40 = arith.constant 0 : index
    %c0_41 = arith.constant 0 : index
    %c0_42 = arith.constant 0 : index
    %102 = vector.load %arg5[%c0_40, %c0_41, %c0_42] : memref<1x8x32xf32, #tpu.memory_space<vmem>>, vector<1x8x32xf32>
    tpu.vector_store %arg5[%c0_40, %c0_41, %c0_42], %101 {strides = array<i32>} : memref<1x8x32xf32, #tpu.memory_space<vmem>>, vector<1x8x32xf32>,
    return
  }
  func.func @transform_0(%arg0: i32) -> (i32, i32, i32) {
    %c0_i32 = arith.constant 0 : i32
    %c0_i32_0 = arith.constant 0 : i32
    %c0_i32_1 = arith.constant 0 : i32
    return %arg0, %c0_i32, %c0_i32_0 : i32, i32, i32
  }
  func.func @transform_1(%arg0: i32) -> (i32, i32) {
    %c0_i32 = arith.constant 0 : i32
    %c0_i32_0 = arith.constant 0 : i32
    %c0_i32_1 = arith.constant 0 : i32
    return %c0_i32, %c0_i32_0 : i32, i32
  }
  func.func @transform_2(%arg0: i32) -> (i32, i32, i32) {
    %c0_i32 = arith.constant 0 : i32
    %c0_i32_0 = arith.constant 0 : i32
    %c0_i32_1 = arith.constant 0 : i32
    %c0_i32_2 = arith.constant 0 : i32
    return %c0_i32, %c0_i32_0, %c0_i32_1 : i32, i32, i32
  }
  func.func @transform_3(%arg0: i32) -> (i32, i32) {
    %c0_i32 = arith.constant 0 : i32
    %c0_i32_0 = arith.constant 0 : i32
    %c0_i32_1 = arith.constant 0 : i32
    return %c0_i32, %c0_i32_0 : i32, i32
  }
  func.func @transform_4(%arg0: i32) -> (i32, i32, i32) {
    %c0_i32 = arith.constant 0 : i32
    %c0_i32_0 = arith.constant 0 : i32
    %c0_i32_1 = arith.constant 0 : i32
    return %arg0, %c0_i32, %c0_i32_0 : i32, i32, i32
  }
}

</mosaic_0001>

<bundles_post_ra>
// kernel: tpu_custom_call.1
= control target key start
LH: loop header
LB: loop body
LE: loop exit
PB: predicated region body
PF: predicated region fallthrough
CT: control target
= control target key end

     0   :  { %9 = vsyncpa [#allocation3], 0  ;;  %s1359_s0 = inlined_call_operand.hbm [shape: f32[2,8,32], index: 0, kind: input, shape index: {}]   ;;  %s1360_s1 = inlined_call_operand.hbm [shape: f32[32,96], index: 1, kind: input, shape index: {}]   ;;  %s1361_s2 = inlined_call_operand.hbm [shape: f32[4,8,32], index: 2, kind: input, shape index: {}]   ;;  %s1362_s3 = inlined_call_operand.vmem [shape: f32[1,32], index: 3, kind: input, shape index: {}]   ;;  %s1363_s4 = inlined_call_operand.hbm [shape: f32[2,8,32], index: 4, kind: output, shape index: {}]  }
   0x1   :  { %11 = vsyncpa [#allocation3 + $0x1], 0 }
   0x2   :  { %12 = vsyncpa [#allocation6], 0 }
   0x3   :  { %13 = vsyncpa [#allocation4], 0 }
   0x4   :  { %15 = vsyncpa [#allocation4 + $0x1], 0  ;;  %s1142_s15 = smov 0   ;;  %s1144_s16 = smov 0  }
   0x5   :  { %s1146_s17 = smov 0   ;;  %s1148_s18 = smov 0  }
   0x6 LB: > { %s152_s21 = sshll.u32 %s1360_s1, 4  ;;  %s1166_s22 = sadd.s32 4294967295, %s1100_s18   ;;  %s1100_s18 = sphi %s1148_s18, %s1374_s18   ;;  %s1096_s17 = sphi %s1146_s17, %s1373_s17   ;;  %s1092_s16 = sphi %s1144_s16, %s1372_s16   ;;  %s1088_s15 = sphi %s1142_s15, %s1371_s15   ;;  %s153_s21 = int_to_ptr.hbm [resolvable:$true] %s152_s21 }
   0x7   : > { %p811_p0 = scmp.ge.s32.totalorder %s1100_s18, 1  ;;  %p42_p1 = scmp.eq.s32.totalorder %s1166_s22, 0 }
   0x8   : > { %p141_p2 = scmp.lt.s32.totalorder %s1100_s18, 3  ;;  %s1102_s24 = smov [#allocation5]  }
   0x9   : > { %s154_s25 = sshll.u32 %s1102_s24, 4  ;;  %s166_s28 = sshll.u32 %s1361_s2, 4  ;;  %s155_s25 = int_to_ptr.vmem [resolvable:$true] %s154_s25  ;;  %s167_s28 = int_to_ptr.hbm [resolvable:$true] %s166_s28 }
   0xa   : > { %p1171_p3 = pnand %p811_p0, %p141_p2  ;;  %s1103_s29 = smov [#allocation7]  }
   0xb   : > { %s168_s30 = sshll.u32 %s1103_s29, 4  ;;  %s1104_s5 = smov 128   ;;  %s169_s30 = int_to_ptr.vmem [resolvable:$true] %s168_s30 }
   0xc   : > { %p855_p4 = pneg %p1171_p3  ;;  %s1105_s6 = smov 8  }
   0xd   : > { %s810_s7 = sadd.s32 4294967294, %s1100_s18   ;;  %s1185_s8 = sadd.s32 1, %s1100_s18  }
   0xe   : > { %p856_p6 = pnand %p855_p4, %p42_p1  ;;  %s25_s9 = ssub.s32 %s1100_s18, %s1185_s8 }
   0xf   : > { %s28_s10 = sadd.s32 1, %s1096_s17  ;;  %p26_p7 = scmp.eq.s32.totalorder %s25_s9, 0 }
  0x10   : > { %858 = dma.hbm_to_vmem [thread:$0]  (!%p856_p6), %s153_s21, 512, %s155_s25, [#allocation6], %s1104_s5, %s1104_s5, %s1105_s6  }
  0x11   : > { %861 = dma.hbm_to_vmem [thread:$0]  (!%p856_p6), %s167_s28, 512, %s169_s30, [#allocation6], %s1104_s5, %s1104_s5, %s1105_s6  }
  0x12   : > { %p35_p8 = scmp.ne.s32.totalorder %s1096_s17, %s1092_s16  ;;  %p36_p9 = scmp.eq.s32.totalorder %s1100_s18, 0 }
  0x13   : > { %p41_p10 = scmp.ne.s32.totalorder %s1092_s16, %s1088_s15  ;;  %p128_p13 = scmp.eq.s32.totalorder %s1166_s22, 1 }
  0x14   : > { %s1196_s11 = scalar_select %p26_p7, %s1096_s17, %s28_s10  }
  0x15   : > { %p1198_p11 = por %p36_p9, %p35_p8  ;;  %p1204_p12 = por %p42_p1, %p41_p10 }
  0x16   : > { %p134_p0 = scmp.eq.s32.totalorder %s810_s7, 1  ;;  %p872_p2 = scmp.lt.s32.totalorder %s1100_s18, 2 }
  0x17   : > { %s185_s14 = sand.u32 1, %s1096_s17   ;;  %p1211_p4 = por %p128_p13, %p35_p8 }
  0x18   : > { %p1215_p6 = por %p134_p0, %p41_p10  ;;  %s815_s21 = sshll.u32 %s185_s14, 3 }
  0x19   : > { %s816_s24 = sshll.u32 %s1100_s18, 3  ;;  %s189_s28 = scalar_lea.vmem [#allocation2], %s815_s21 }
  0x1a   : > { %s193_s27 = scalar_lea.hbm %s1359_s0, %s816_s24  ;;  %s197_s29 = sshll.u32 %s189_s28, 4  ;;  %s198_s29 = int_to_ptr.vmem [resolvable:$true] %s197_s29 }
  0x1b   : > { %s195_s30 = sshll.u32 %s193_s27, 4  ;;  %p1225_p7 = pnand %p872_p2, %p1198_p11  ;;  %s196_s30 = int_to_ptr.hbm [resolvable:$true] %s195_s30 }
  0x1c   : > { %s186_s6 = scalar_lea.sflag [#allocation3], %s185_s14  ;;  %s1000_s7 = sshra.s32 %s196_s30, 4  ;;  %s1001_s7 = int_to_ptr.hbm [resolvable:$true] %s1000_s7 }
  0x1d   : > { %s1002_s9 = scalar_lea.hbm %s1001_s7, 8  ;;  %p1004_p9 = pneg %p1225_p7 }
  0x1e   : > { %p1003_p8 = scmp.ne.s32.totalorder %s1001_s7, %s1002_s9  ;;  %s1007_s24 = scalar_lea.hbm %s1359_s0, 16 }
  0x1f   : > { %p1008_p11 = scmp.lt.s32.totalorder %s1001_s7, %s1359_s0  ;;  %p1009_p0 = scmp.lt.s32.totalorder %s1007_s24, %s1002_s9 }
  0x20   : > { %p1005_p10 = pnand %p1004_p9, %p1003_p8 }
  0x21   : > { %p1010_p2 = por %p1009_p0, %p1008_p11 }
  0x22   : > { %p1006_p13 = pneg %p1005_p10 }
  0x24   : > { %p1011_p5 = pnand %p1010_p2, %p1006_p13 }
  0x26   : > { %1014 = shalt.err (!%p1011_p5)
}
  0x27   : > { %865 = dma.hbm_to_vmem [thread:$0]  (!%p1225_p7), %s196_s30, 128, %s198_s29, %s186_s6  }
  0x28   : > { %206 = sbr.rel (%p1171_p3) target bundleno = 1502 (0x5de), region = 36  ;;  %s1242_s14 = sand.u32 (!%p1171_p3), 1, %s1092_s16  }
  0x29   : > { %s818_s26 = sshll.u32 (!%p1171_p3), %s1242_s14, 3  ;;  %s209_s27 = scalar_lea.sflag (!%p1171_p3), [#allocation3], %s1242_s14 }
  0x2a   : > { %s212_s28 = scalar_lea.vmem (!%p1171_p3), [#allocation2], %s818_s26 }
  0x2d   : > { %1075 = dma.done.wait (%p1204_p12), %s209_s27, 128  }
  0x2e   : > { %1077 = vsyncadd (%p1204_p12), %s209_s27, 4294967168 }
  0x2f   : > { %1079 = dma.done.wait (%p42_p1), [#allocation6], 1024  }
  0x30   : > { %1081 = vsyncadd (%p42_p1), [#allocation6], 4294966272  ;;  %v252_v0 = vld [vmem:[#allocation5 + $0x18] sm:$0xff]  ;;  %v251_v1 = vld [vmem:[#allocation5 + $0x10] sm:$0xff]  ;;  %vm253_vm0 = vcmask 261120   ;;  %s1106_s23 = smov 88   ;;  %v277_v13 = vlaneseq }
  0x31   : > { %269 = vmatpush.msra.mxu0 %v252_v0  ;;  %v250_v2 = vld [vmem:[#allocation5 + $0x8] sm:$0xff]  ;;  %v249_v3 = vld [vmem:[#allocation5] sm:$0xff]  ;;  %v248_v4 = vld [vmem:[%s212_s28] sm:$0xff]  ;;  %s1107_s13 = smov 96   ;;  %s1108_s29 = smov 120   ;;  %vm285_vm1 = vcmask 64512  }
  0x32   : > { %s1109_s30 = smov 72   ;;  %s1110_s5 = smov 104   ;;  %v361_v6 = vld [vmem:[#allocation7] sm:$0xff]  ;;  %v1272_v14 = vshrl.u32 %v277_v13, 7  ;;  %v1274_v15 = vand.u32 127, %v277_v13 }
  0x33   : > { %270 = vmatpush.msra.mxu0 %v251_v1  ;;  %s1111_s6 = smov 80   ;;  %s1112_s7 = smov 56  }
  0x34   : > { %vm281_vm2 = vcmp.le.s32.totalorder %v1274_v15, %v1272_v14  ;;  %s1113_s9 = smov 64   ;;  %s1114_s10 = smov 112  }
  0x35   : > { %271 = vmatpush.msra.mxu0 %v250_v2  ;;  %s1115_s21 = smov 40   ;;  %s1116_s24 = smov 48  }
  0x36   : > { %s840_s25 = sshll.u32 %s1166_s22, 3  ;;  %s706_s22 = scalar_lea.sflag [#allocation4], %s1242_s14 }
  0x37   : > { %272 = vmatpush.msra.mxu0 %v249_v3  ;;  %s716_s28 = scalar_lea.hbm %s1363_s4, %s840_s25 }
  0x38   : > { %822 = vmatmul.msk.f32.vlgmr.msra.gmra.mxu0 %vm253_vm0, %v248_v4 }
  0xb5   : > { %v1257_v5 = vpop.f32.mrf.mxu0 }
  0xb6   : > { %364 = vrot.lane.b32.xlu2 %v1257_v5, %s1106_s23  ;;  %283 = vrot.lane.b32.xlu0 %v1257_v5, %s1107_s13 }
  0xbe   : > { %362 = vrot.lane.b32.xlu2 %v1257_v5, %s1108_s29  ;;  %s247_s29 = scalar_lea.vmem [#allocation8], %s818_s26  ;;  %s1050_s26 = scalar_lea.hbm %s1363_s4, 16 }
  0xc6   : > { %596 = vrot.lane.b32.xlu2 %v1257_v5, %s1109_s30  ;;  %s718_s30 = sshll.u32 %s247_s29, 4  ;;  %s719_s30 = int_to_ptr.vmem [resolvable:$true] %s718_s30 }
  0xce   : > { %594 = vrot.lane.b32.xlu2 %v1257_v5, %s1110_s5  ;;  %s720_s5 = sshll.u32 %s716_s28, 4  ;;  %s721_s5 = int_to_ptr.hbm [resolvable:$true] %s720_s5 }
  0xd6   : > { %491 = vrot.lane.b32.xlu2 %v1257_v5, %s1111_s6  ;;  %s1044_s6 = sshra.s32 %s721_s5, 4  ;;  %s1045_s6 = int_to_ptr.hbm [resolvable:$true] %s1044_s6 }
  0xd7   : > { %p1051_p12 = scmp.lt.s32.totalorder %s1045_s6, %s1363_s4 }
 0x110   : > { %v365_v7 = vpop.permute.xlu2 %364 }
 0x111   : > { %826 = vmatpush.xpose.msk.msra.mxu3 %vm285_vm1, %v365_v7 }
 0x115   : > { %484 = vmatpush.msrb.mxu3 %v361_v6 }
 0x118   : > { %v363_v8 = vpop.permute.xlu2 %362 }
 0x119   : > { %827 = vmatmul.msk.f32.vlgmr.msra.gmra.mxu3 %vm285_vm1, %v363_v8 }
 0x120   : > { %v597_v9 = vpop.permute.xlu2 %596 }
 0x121   : > { %835 = vmatpush.xpose.msk.msra.mxu3 %vm285_vm1, %v597_v9 }
 0x128   : > { %v595_v10 = vpop.permute.xlu2 %594  ;;  %v284_v11 = vpop.permute.xlu0 %283 }
 0x129   : > { %823 = vmatpush.xpose.msk.msra.mxu1 %vm285_vm1, %v284_v11 }
 0x12c   : > { %824 = vmatmul.msk.f32.vlgmr.msra.gmra.mxu1 %vm285_vm1, %v1257_v5 }
 0x130   : > { %v492_v12 = vpop.permute.xlu2 %491 }
 0x131   : > { %831 = vmatpush.xpose.msk.msrb.mxu0 %vm285_vm1, %v492_v12 }
 0x19c   : > { %v387_v16 = vpop.f32.mrf.mxu3 }
 0x19d   : > { %v390_v17 = vsel %vm281_vm2, %v387_v16, -inf }
 0x19e   : > { %v391_v18 = vsel %vm285_vm1, %v390_v17, -inf }
 0x19f   : > { %392 = vmax.xlane.f32.xlu2 %v391_v18  ;;  %v442_v18 = vld [vmem:[#allocation7 + $0x8] sm:$0xff] }
 0x1a0   : > { %461 = vmatpush.msrb.mxu1 %v442_v18 }
 0x1a9   : > { %v307_v19 = vpop.f32.mrf.mxu1 }
 0x1aa   : > { %v310_v20 = vsel %vm281_vm2, %v307_v19, -inf }
 0x1ab   : > { %v311_v21 = vsel %vm285_vm1, %v310_v20, -inf }
 0x1ac   : > { %312 = vmax.xlane.f32.xlu0 %v311_v21 }
 0x1b7   : > { %415 = vrot.lane.b32.xlu2 %v1257_v5, %s1112_s7  ;;  %s1046_s7 = scalar_lea.hbm %s1045_s6, 8 }
 0x1b8   : > { %p1047_p1 = scmp.ne.s32.totalorder %s1045_s6, %s1046_s7  ;;  %p1052_p7 = scmp.lt.s32.totalorder %s1050_s26, %s1046_s7 }
 0x1ba   : > { %p1048_p3 = pnand %p1047_p1, %p1211_p4  ;;  %p1053_p8 = por %p1052_p7, %p1051_p12 }
 0x1bc   : > { %p1049_p5 = pneg %p1048_p3 }
 0x1be   : > { %p1054_p9 = pnand %p1053_p8, %p1049_p5 }
 0x212   : > { %v393_v34 = vpop.xlane.xlu2 %392 }
 0x213   : > { %v394_v48 = vsub.f32 %v390_v17, %v393_v34 }
 0x215   : > { %v395_v50 = vmul.f32 1.442695, %v394_v48 }
 0x21a   : > { %v416_v41 = vpop.permute.xlu2 %415 }
 0x21f   : > { %v313_v22 = vpop.xlane.xlu0 %312 }
 0x220   : > { %v314_v23 = vsub.f32 %v310_v20, %v313_v22 }
 0x222   : > { %v315_v24 = vmul.f32 1.442695, %v314_v23 }
 0x224   : > { %924 = vpow2.f32 %v315_v24 }
 0x22a   : > { %v925_v25 = vpop.eup %924 }
 0x22b   : > { %v317_v26 = vsel %vm285_vm1, %v925_v25, 0.0 }
 0x22c   : > { %318 = vadd.xlane.f32.xlu1 %v317_v26 }
 0x245   : > { %335 = vrot.lane.b32.xlu1 %v1257_v5, %s1113_s9 }
 0x24d   : > { %489 = vrot.lane.b32.xlu1 %v1257_v5, %s1114_s10 }
 0x29f   : > { %v319_v27 = vpop.xlane.xlu1 %318 }
 0x2a0   : > { %926 = vrcp.f32 %v319_v27  ;;  %v331_v33 = vand.u32 2147483648, %v319_v27  ;;  %vm325_vm4 = vweird.f32 %v319_v27  ;;  %v329_v35 = vand.u32 2147483647, %v319_v27 }
 0x2a1   : > { %928 = vpow2.f32 %v395_v50  ;;  %v923_v50 = vld [vmem:[%s1362_s3] ss:$0 sm:$0xff] }
 0x2a2   : > { %v332_v37 = vor.u32 1.1754944e-38, %v331_v33  ;;  %vm330_vm6 = vcmp.eq.f32.partialorder %v329_v35, 8.507059e+37 }
 0x2a6   : > { %v927_v28 = vpop.eup %926 }
 0x2a7   : > { %v321_v29 = vmul.f32 %v927_v28, %v319_v27  ;;  %vm326_vm3 = vweird.f32 %v927_v28  ;;  %v929_v57 = vpop.eup %928 }
 0x2a8   : > { %vm327_vm5 = vmor %vm325_vm4, %vm326_vm3  ;;  %v397_v58 = vsel %vm285_vm1, %v929_v57, 0.0 }
 0x2a9   : > { %v322_v30 = vsub.f32 1.0, %v321_v29 }
 0x2ab   : > { %v323_v31 = vmul.f32 %v927_v28, %v322_v30 }
 0x2ad   : > { %v324_v32 = vadd.f32 %v927_v28, %v323_v31 }
 0x2af   : > { %v328_v36 = vsel %vm327_vm5, %v927_v28, %v324_v32 }
 0x2b0   : > { %v333_v38 = vsel %vm330_vm6, %v332_v37, %v328_v36 }
 0x2b1   : > { %v334_v40 = vmul.f32 %v925_v25, %v333_v38 }
 0x2b7   : > { %v336_v39 = vpop.permute.xlu1 %335 }
 0x2b8   : > { %356 = vmatpush.msra.mxu2 %v336_v39 }
 0x2b9   : > { %825 = vmatmul.msk.f32.vlgmr.msra.gmra.mxu2 %vm285_vm1, %v334_v40 }
 0x2ba   : > { %436 = vmatpush.msrb.mxu2 %v416_v41  ;;  %v674_v41 = vld [vmem:[#allocation7 + $0x18] sm:$0xff] }
 0x2bf   : > { %v490_v42 = vpop.permute.xlu1 %489 }
 0x2c0   : > { %832 = vmatmul.msk.f32.vlgmr.msrb.gmra.mxu0 %vm285_vm1, %v490_v42  ;;  %v569_v42 = vld [vmem:[#allocation7 + $0x10] sm:$0xff] }
 0x2c1   : > { %588 = vmatpush.msra.mxu1 %v569_v42 }
 0x33c   : > { %v358_v43 = vpop.f32.mrf.mxu2 }
 0x33d   : > { %830 = vmatmul.msk.f32.vlgmr.msrb.gmra.mxu3 %vm285_vm1, %v358_v43  ;;  %v514_v44 = vpop.f32.mrf.mxu0 }
 0x33e   : > { %v517_v45 = vsel %vm281_vm2, %v514_v44, -inf }
 0x33f   : > { %v518_v46 = vsel %vm285_vm1, %v517_v45, -inf }
 0x340   : > { %519 = vmax.xlane.f32.xlu1 %v518_v46 }
 0x345   : > { %836 = vmatmul.msk.f32.vlgmr.msra.gmra.mxu3 %vm285_vm1, %v595_v10 }
 0x359   : > { %647 = vrot.lane.b32.xlu1 %v1257_v5, %s1115_s21 }
 0x3b3   : > { %v520_v49 = vpop.xlane.xlu1 %519 }
 0x3b4   : > { %v521_v52 = vsub.f32 %v517_v45, %v520_v49 }
 0x3b6   : > { %v522_v56 = vmul.f32 1.442695, %v521_v52 }
 0x3b8   : > { %930 = vpow2.f32 %v522_v56 }
 0x3be   : > { %v1306_v59 = vpop.eup %930 }
 0x3bf   : > { %v524_v60 = vsel %vm285_vm1, %v1306_v59, 0.0 }
 0x3c0   : > { %v1299_v47 = vpop.f32.mrf.mxu3 }
 0x3c8   : > { %v619_v51 = vpop.f32.mrf.mxu3 }
 0x3c9   : > { %v622_v53 = vsel %vm281_vm2, %v619_v51, -inf }
 0x3ca   : > { %v623_v54 = vsel %vm285_vm1, %v622_v53, -inf }
 0x3cb   : > { %624 = vmax.xlane.f32.xlu0 %v623_v54  ;;  %v648_v55 = vpop.permute.xlu1 %647 }
 0x3cc   : > { %668 = vmatpush.msra.mxu0 %v648_v55 }
 0x3d3   : > { %398 = vadd.xlane.f32.xlu0 %v397_v58 }
 0x3db   : > { %525 = vadd.xlane.f32.xlu0 %v524_v60 }
 0x43e   : > { %v625_v61 = vpop.xlane.xlu0 %624 }
 0x43f   : > { %v626_v62 = vsub.f32 %v622_v53, %v625_v61 }
 0x441   : > { %v627_v63 = vmul.f32 1.442695, %v626_v62 }
 0x443   : > { %932 = vpow2.f32 %v627_v63 }
 0x446   : > { %v399_v0 = vpop.xlane.xlu0 %398 }
 0x447   : > { %934 = vrcp.f32 %v399_v0  ;;  %v411_v7 = vand.u32 2147483648, %v399_v0  ;;  %v409_v9 = vand.u32 2147483647, %v399_v0  ;;  %vm405_vm8 = vweird.f32 %v399_v0 }
 0x449   : > { %v933_v1 = vpop.eup %932  ;;  %v412_v11 = vor.u32 1.1754944e-38, %v411_v7  ;;  %vm410_vm10 = vcmp.eq.f32.partialorder %v409_v9, 8.507059e+37 }
 0x44a   : > { %v629_v2 = vsel %vm285_vm1, %v933_v1, 0.0 }
 0x44b   : > { %630 = vadd.xlane.f32.xlu0 %v629_v2 }
 0x44d   : > { %v935_v3 = vpop.eup %934 }
 0x44e   : > { %v401_v4 = vmul.f32 %v935_v3, %v399_v0  ;;  %vm406_vm7 = vweird.f32 %v935_v3  ;;  %v526_v15 = vpop.xlane.xlu0 %525 }
 0x44f   : > { %vm407_vm9 = vmor %vm405_vm8, %vm406_vm7  ;;  %936 = vrcp.f32 %v526_v15  ;;  %v538_v25 = vand.u32 2147483648, %v526_v15  ;;  %vm532_vm12 = vweird.f32 %v526_v15  ;;  %v536_v27 = vand.u32 2147483647, %v526_v15 }
 0x450   : > { %v402_v6 = vsub.f32 1.0, %v401_v4 }
 0x451   : > { %v539_v31 = vor.u32 1.1754944e-38, %v538_v25  ;;  %vm537_vm2 = vcmp.eq.f32.partialorder %v536_v27, 8.507059e+37 }
 0x452   : > { %v403_v8 = vmul.f32 %v935_v3, %v402_v6 }
 0x454   : > { %v404_v10 = vadd.f32 %v935_v3, %v403_v8 }
 0x455   : > { %v937_v16 = vpop.eup %936 }
 0x456   : > { %v408_v12 = vsel %vm407_vm9, %v935_v3, %v404_v10  ;;  %v528_v17 = vmul.f32 %v937_v16, %v526_v15  ;;  %vm533_vm11 = vweird.f32 %v937_v16 }
 0x457   : > { %v413_v13 = vsel %vm410_vm10, %v412_v11, %v408_v12  ;;  %vm534_vm13 = vmor %vm532_vm12, %vm533_vm11 }
 0x458   : > { %v414_v14 = vmul.f32 %v929_v57, %v413_v13  ;;  %v529_v20 = vsub.f32 1.0, %v528_v17 }
 0x45a   : > { %828 = vmatmul.msk.f32.vlgmr.msrb.gmra.mxu2 %vm285_vm1, %v414_v14  ;;  %v530_v21 = vmul.f32 %v937_v16, %v529_v20 }
 0x45c   : > { %v531_v24 = vadd.f32 %v937_v16, %v530_v21 }
 0x45e   : > { %v535_v30 = vsel %vm534_vm13, %v937_v16, %v531_v24 }
 0x45f   : > { %542 = vrot.lane.b32.xlu0 %v1257_v5, %s1116_s24  ;;  %v540_v34 = vsel %vm537_vm2, %v539_v31, %v535_v30 }
 0x460   : > { %v541_v39 = vmul.f32 %v1306_v59, %v540_v34 }
 0x4be   : > { %v631_v19 = vpop.xlane.xlu0 %630 }
 0x4bf   : > { %938 = vrcp.f32 %v631_v19  ;;  %v643_v28 = vand.u32 2147483648, %v631_v19  ;;  %v641_v29 = vand.u32 2147483647, %v631_v19  ;;  %vm637_vm15 = vweird.f32 %v631_v19 }
 0x4c1   : > { %v644_v33 = vor.u32 1.1754944e-38, %v643_v28  ;;  %vm642_vm4 = vcmp.eq.f32.partialorder %v641_v29, 8.507059e+37 }
 0x4c5   : > { %v939_v22 = vpop.eup %938 }
 0x4c6   : > { %v633_v23 = vmul.f32 %v939_v22, %v631_v19  ;;  %vm638_vm14 = vweird.f32 %v939_v22 }
 0x4c7   : > { %vm639_vm3 = vmor %vm637_vm15, %vm638_vm14 }
 0x4c8   : > { %v634_v26 = vsub.f32 1.0, %v633_v23 }
 0x4ca   : > { %v635_v5 = vmul.f32 %v939_v22, %v634_v26 }
 0x4cc   : > { %v636_v32 = vadd.f32 %v939_v22, %v635_v5 }
 0x4ce   : > { %v640_v35 = vsel %vm639_vm3, %v939_v22, %v636_v32 }
 0x4cf   : > { %v645_v36 = vsel %vm642_vm4, %v644_v33, %v640_v35 }
 0x4d0   : > { %v646_v37 = vmul.f32 %v933_v1, %v645_v36 }
 0x4d1   : > { %v543_v38 = vpop.permute.xlu0 %542 }
 0x4d2   : > { %563 = vmatpush.msra.mxu2 %v543_v38  ;;  %837 = vmatmul.msk.f32.vlgmr.msra.gmra.mxu0 %vm285_vm1, %v646_v37 }
 0x4d3   : > { %833 = vmatmul.msk.f32.vlgmr.msra.gmra.mxu2 %vm285_vm1, %v541_v39 }
 0x4d4   : > { %693 = vmatpush.msrb.mxu2 %v674_v41 }
 0x4dd   : > { %v438_v40 = vpop.f32.mrf.mxu2 }
 0x4de   : > { %829 = vmatmul.msk.f32.vlgmr.msrb.gmra.mxu1 %vm285_vm1, %v438_v40 }
 0x54f   : > { %v670_v43 = vpop.f32.mrf.mxu0 }
 0x550   : > { %838 = vmatmul.msk.f32.vlgmr.msrb.gmra.mxu2 %vm285_vm1, %v670_v43 }
 0x556   : > { %v565_v44 = vpop.f32.mrf.mxu2 }
 0x557   : > { %834 = vmatmul.msk.f32.vlgmr.msra.gmra.mxu1 %vm285_vm1, %v565_v44 }
 0x55b   : > { %v463_v45 = vpop.f32.mrf.mxu1 }
 0x55c   : > { %v487_v46 = vadd.f32 %v1299_v47, %v463_v45 }
 0x5d3   : > { %v695_v51 = vpop.f32.mrf.mxu2 }
 0x5d4   : > { %v590_v48 = vpop.f32.mrf.mxu1 }
 0x5d5   : > { %v593_v49 = vadd.f32 %v590_v48, %v487_v46 }
 0x5d7   : > { %v698_v52 = vadd.f32 %v695_v51, %v593_v49 }
 0x5d9   : > { %v703_v53 = vadd.f32 %v923_v50, %v698_v52 }
 0x5db   : > { %704 = vst.msk [vmem:[%s247_s29] sm:$0xff] %vm253_vm0, %v703_v53 }
 0x5dc   : > { %1057 = shalt.err (!%p1054_p9)
}
 0x5dd   : > { %853 = dma.vmem_to_hbm [thread:$0]  (%p1211_p4), %s719_s30, 128, %s721_s5, %s706_s22  }
 0x5de PF: > { %s732_s14 = sand.u32 1, %s1088_s15   ;;  %p1370_p10 = scmp.ge.s32.totalorder %s1100_s18, 2 }
 0x5df   : > { %s733_s25 = scalar_lea.sflag [#allocation4], %s732_s14 }
 0x5e0   : > { %p867_p13 = pnand %p1370_p10, %p1215_p6 }
 0x5e2   : > { %p868_p11 = pneg %p867_p13 }
 0x5e4   : > { %1083 = dma.done.wait (%p868_p11), %s733_s25, 128  }
 0x5e5   : > { %1085 = vsyncadd (%p868_p11), %s733_s25, 4294967168  ;;  %p18_p0 = scmp.ge.s32.totalorder %s1185_s8, 4   ;;  %s1371_s15 = smov %s1092_s16 }
 0x5e6   : > { %s1372_s16 = smov %s1096_s17  ;;  %s1373_s17 = smov %s1196_s11 }
 0x5e7   : > { %s1374_s18 = smov %s1185_s8  ;;  %20 = sbr.rel (!%p18_p0) target bundleno = 6 (0x6), region = 92 }
 0x5ec   :  { %739 = vsyncpa [#allocation3], 1 }
 0x5ed   :  { %741 = vsyncpa [#allocation3 + $0x1], 1 }
 0x5ee   :  { %742 = vsyncpa [#allocation6], 1 }
 0x5ef   :  { %743 = vsyncpa [#allocation4], 1 }
 0x5f0   :  { %745 = vsyncpa [#allocation4 + $0x1], 1 }

</bundles_post_ra>
